<compile_context>
chip_gen: v7x
topology: tpu7x:2x2x1
jax: 0.10.0
libtpu: 0.0.40
codegen_flags: <defaults>
</compile_context>

<pallas_src>
import functools

import jax
import jax.numpy as jnp
from jax.experimental import pallas as pl
from jax.experimental.pallas import tpu as pltpu


_NCORES = 2                             # megacore split for pass 1 (harmless on 1-TC chips)
_TARGET_TILE_BYTES = 2 * 1024 * 1024    # ~2 MiB x-tile -> near-roofline mem-bound tiles
_VMEM_LIMIT_BYTES = 32 * 1024 * 1024    # explicit scoped-VMEM (> v5e 16 MiB default, < v7x 64 MiB phys)
_FAST_PATH_BYTES = 2 * 1024 * 1024      # fully-VMEM-resident single-pass threshold


def _round_up(v, m):
    return ((v + m - 1) // m) * m


def _choose_tile_rows(R, HW_pad, itemsize):
    """Row-tile so each x tile is ~_TARGET_TILE_BYTES, multiple of 8, no huge padding."""
    rows = _TARGET_TILE_BYTES // max(1, HW_pad * itemsize)
    rows = max(8, (rows // 8) * 8)
    cap = max(8, _round_up((R + _NCORES - 1) // _NCORES, 8))
    return min(rows, cap)


# ---------------------------------------------------------------------------
# Pass 1: per-core partial sum of squares over the whole (R, HW) slab.
#   grid = (NCORES, steps); the accumulator is tile-shaped f32 VMEM so per-step
#   work is pure VPU; the full cross-lane reduction happens once per core.
# ---------------------------------------------------------------------------
def _ssq_kernel(x_ref, o_ref, acc_ref):
    s = pl.program_id(1)
    x = x_ref[...].astype(jnp.float32)
    xx = x * x

    @pl.when(s == 0)
    def _():
        acc_ref[...] = xx

    @pl.when(s > 0)
    def _():
        acc_ref[...] += xx

    @pl.when(s == pl.num_programs(1) - 1)
    def _():
        o_ref[0, 0, 0] = jnp.sum(acc_ref[...])


# ---------------------------------------------------------------------------
# Pass 2: out = x * scale_row + bias_row   (inv_denom already folded into scale)
# ---------------------------------------------------------------------------
def _bn_kernel(x_ref, scale_ref, bias_ref, o_ref):
    x = x_ref[...].astype(jnp.float32)
    o_ref[...] = (x * scale_ref[...] + bias_ref[...]).astype(o_ref.dtype)


# ---------------------------------------------------------------------------
# Fused fully-resident fast path (small activations): one HBM read of x.
# ---------------------------------------------------------------------------
def _make_fused_kernel(count, eps):
    def kernel(x_ref, g_ref, b_ref, o_ref):
        x = x_ref[...].astype(jnp.float32)
        ssq = jnp.sum(x * x)
        inv = jnp.float32(1.0) / jnp.sqrt(ssq / jnp.float32(count) + jnp.float32(eps))
        o_ref[...] = ((x * inv) * g_ref[...] + b_ref[...]).astype(o_ref.dtype)
    return kernel


@functools.partial(jax.jit, static_argnames=("eps", "force_two_pass"))
def quaternion_batchnorm2d(x, gamma, beta, eps=1e-5, force_two_pass=False):
    """x: (B, C, H, W) NCHW; gamma: (1, C//4, 1, 1); beta: (1, C, 1, 1)."""
    B, C, H, W = x.shape
    assert C % 4 == 0, "channel count must be divisible by 4 (quaternion)"
    qf = C // 4
    R = B * C
    HW = H * W
    itemsize = jnp.dtype(x.dtype).itemsize

    x2 = x.reshape(R, HW)

    # Per-row affine params (row = b*C + c): gamma applies per quaternion
    # feature (c % qf), beta per full channel (c) -- matches chunk/cat layout.
    ch = jnp.arange(C)
    gamma_c = gamma.reshape(qf)[ch % qf]
    beta_c = beta.reshape(C)
    g_rows = jnp.tile(gamma_c, (B,)).reshape(R, 1).astype(jnp.float32)
    b_rows = jnp.tile(beta_c, (B,)).reshape(R, 1).astype(jnp.float32)

    count = float(B * qf * H * W)       # elements per quaternion component

    # ---- fast path: everything resident in VMEM, single kernel ------------
    if (not force_two_pass) and R * HW * itemsize <= _FAST_PATH_BYTES:
        out2 = pl.pallas_call(
            _make_fused_kernel(count, eps),
            out_shape=jax.ShapeDtypeStruct((R, HW), x.dtype),
            compiler_params=pltpu.CompilerParams(
                vmem_limit_bytes=_VMEM_LIMIT_BYTES),
            cost_estimate=pl.CostEstimate(
                flops=4 * R * HW, transcendentals=1,
                bytes_accessed=2 * R * HW * itemsize),
        )(x2, g_rows, b_rows)
        return out2.reshape(B, C, H, W)

    # ---- tiled two-pass path ----------------------------------------------
    # Lane-dense layout: pad HW to a multiple of 128; pad rows to a multiple of
    # NCORES*tile_rows so the grid divides evenly (zero padding contributes 0
    # to the sum of squares; padded outputs are sliced off).
    HW_pad = _round_up(HW, 128)
    tr = _choose_tile_rows(R, HW_pad, itemsize)
    chunk = _NCORES * tr
    R_pad = _round_up(R, chunk)

    if HW_pad != HW or R_pad != R:
        xp = jnp.pad(x2, ((0, R_pad - R), (0, HW_pad - HW)))
    else:
        xp = x2
    if R_pad != R:
        g_rows = jnp.pad(g_rows, ((0, R_pad - R), (0, 0)))
        b_rows = jnp.pad(b_rows, ((0, R_pad - R), (0, 0)))

    steps = R_pad // chunk

    # pass 1: partial sums of squares (one partial per "core slice")
    partials = pl.pallas_call(
        _ssq_kernel,
        out_shape=jax.ShapeDtypeStruct((_NCORES, 1, 1), jnp.float32),
        grid_spec=pltpu.PrefetchScalarGridSpec(
            num_scalar_prefetch=0,
            grid=(_NCORES, steps),
            in_specs=[pl.BlockSpec((tr, HW_pad),
                                   lambda c, s: (c * steps + s, 0))],
            out_specs=pl.BlockSpec((1, 1, 1), lambda c, s: (c, 0, 0)),
            scratch_shapes=[pltpu.VMEM((tr, HW_pad), jnp.float32)],
        ),
        compiler_params=pltpu.CompilerParams(
            dimension_semantics=("parallel", "arbitrary"),
            vmem_limit_bytes=_VMEM_LIMIT_BYTES),
        cost_estimate=pl.CostEstimate(
            flops=2 * R_pad * HW_pad, transcendentals=0,
            bytes_accessed=R_pad * HW_pad * itemsize),
    )(xp)

    # glue: variance -> 1/denominator, folded into the per-row scale
    quat_var = jnp.sum(partials) / jnp.float32(count)
    inv_denom = jnp.float32(1.0) / jnp.sqrt(quat_var + jnp.float32(eps))
    scale_rows = g_rows * inv_denom

    # pass 2: normalize + affine
    out_p = pl.pallas_call(
        _bn_kernel,
        out_shape=jax.ShapeDtypeStruct((R_pad, HW_pad), x.dtype),
        grid_spec=pltpu.PrefetchScalarGridSpec(
            num_scalar_prefetch=0,
            grid=(R_pad // tr,),
            in_specs=[
                pl.BlockSpec((tr, HW_pad), lambda i: (i, 0)),   # x tile
                pl.BlockSpec((tr, 1), lambda i: (i, 0)),        # per-row scale
                pl.BlockSpec((tr, 1), lambda i: (i, 0)),        # per-row bias
            ],
            out_specs=pl.BlockSpec((tr, HW_pad), lambda i: (i, 0)),
        ),
        compiler_params=pltpu.CompilerParams(
            dimension_semantics=("parallel",),
            vmem_limit_bytes=_VMEM_LIMIT_BYTES),
        cost_estimate=pl.CostEstimate(
            flops=2 * R_pad * HW_pad, transcendentals=0,
            bytes_accessed=2 * R_pad * HW_pad * itemsize),
    )(xp, scale_rows, b_rows)

    if R_pad != R or HW_pad != HW:
        out_p = out_p[:R, :HW]
    return out_p.reshape(B, C, H, W)


def _reference(x, gamma, beta, eps=1e-5):
    """Pure-JAX reference mirroring the PyTorch module."""
    r, i, j, k = jnp.split(x, 4, axis=1)
    quat_var = jnp.mean(r ** 2 + i ** 2 + j ** 2 + k ** 2)
    denom = jnp.sqrt(quat_var + eps)
    comps = [r / denom, i / denom, j / denom, k / denom]
    betas = jnp.split(beta, 4, axis=1)
    outs = [gamma * c + b for c, b in zip(comps, betas)]
    return jnp.concatenate(outs, axis=1)


if __name__ == "__main__":
    key = jax.random.PRNGKey(0)
    k1, k2, k3, k4 = jax.random.split(key, 4)

    # Primary shape: num = C = 4 -> num_features = 1, module-default params.
    B, C, H, W = 2, 4, 16, 16
    x = jax.random.normal(k1, (B, C, H, W), dtype=jnp.float32)
    gamma = jnp.full((1, C // 4, 1, 1), 1.0, dtype=jnp.float32)   # gamma_init
    beta = jnp.zeros((1, C, 1, 1), dtype=jnp.float32)

    ref = _reference(x, gamma, beta)

    # Fast (fully VMEM-resident, single-pass) path.
    out_fast = jax.block_until_ready(quaternion_batchnorm2d(x, gamma, beta))
    assert out_fast.shape == (B, C, H, W)
    assert jnp.allclose(out_fast, ref, atol=1e-5, rtol=1e-5)

    # Tiled two-pass path (exercises padding + megacore-split reduction).
    out_tiled = jax.block_until_ready(
        quaternion_batchnorm2d(x, gamma, beta, force_two_pass=True))
    assert jnp.allclose(out_tiled, ref, atol=1e-5, rtol=1e-5)

    # Lane-unaligned / row-unaligned shape with non-trivial gamma/beta
    # (exercises HW->128 and row padding plus the affine indexing).
    B2, C2, H2, W2 = 2, 8, 7, 7
    x_b = jax.random.normal(k2, (B2, C2, H2, W2), dtype=jnp.float32)
    gamma_b = jax.random.normal(k3, (1, C2 // 4, 1, 1), dtype=jnp.float32)
    beta_b = jax.random.normal(k4, (1, C2, 1, 1), dtype=jnp.float32)
    ref_b = _reference(x_b, gamma_b, beta_b)
    out_b = jax.block_until_ready(
        quaternion_batchnorm2d(x_b, gamma_b, beta_b, force_two_pass=True))
    assert jnp.allclose(out_b, ref_b, atol=1e-5, rtol=1e-5)

    print("KERNEL_OK")
</pallas_src>

<mosaic_0001>
module attributes {stable_mosaic.version = 11 : i64} {
  func.func @kernel(%arg0: memref<8x256xf32, #tpu.memory_space<vmem>>, %arg1: memref<8x1xf32, #tpu.memory_space<vmem>>, %arg2: memref<8x1xf32, #tpu.memory_space<vmem>>, %arg3: memref<8x256xf32, #tpu.memory_space<vmem>>) attributes {dimension_semantics = [], scalar_prefetch = 0 : i64, scratch_operands = 0 : i64, tpu.core_type = #tpu.core_type<tc>} {
    %c0 = arith.constant 0 : index
    %c0_0 = arith.constant 0 : index
    %0 = vector.load %arg0[%c0, %c0_0] : memref<8x256xf32, #tpu.memory_space<vmem>>, vector<8x256xf32>
    %1 = arith.mulf %0, %0 : vector<8x256xf32>
    %2 = vector.shape_cast %1 : vector<8x256xf32> to vector<1x8x256xf32>
    %cst = arith.constant dense<0.000000e+00> : vector<1xf32>
    %3 = vector.multi_reduction <add>, %2, %cst [1, 2] : vector<1x8x256xf32> to vector<1xf32>
    %4 = vector.shape_cast %3 : vector<1xf32> to vector<1x1x1xf32>
    %5 = vector.extract %4[0, 0, 0] : f32 from vector<1x1x1xf32>
    %cst_1 = arith.constant 5.120000e+02 : f32
    %6 = arith.divf %5, %cst_1 : f32
    %cst_2 = arith.constant 9.99999974E-6 : f32
    %7 = arith.addf %6, %cst_2 : f32
    %8 = math.sqrt %7 : f32
    %cst_3 = arith.constant 1.000000e+00 : f32
    %9 = arith.divf %cst_3, %8 : f32
    %10 = vector.broadcast %9 : f32 to vector<8x256xf32>
    %11 = arith.mulf %0, %10 : vector<8x256xf32>
    %c0_4 = arith.constant 0 : index
    %c0_5 = arith.constant 0 : index
    %12 = vector.load %arg1[%c0_4, %c0_5] : memref<8x1xf32, #tpu.memory_space<vmem>>, vector<8x1xf32>
    %13 = vector.broadcast %12 : vector<8x1xf32> to vector<8x256xf32>
    %14 = arith.mulf %11, %13 : vector<8x256xf32>
    %c0_6 = arith.constant 0 : index
    %c0_7 = arith.constant 0 : index
    %15 = vector.load %arg2[%c0_6, %c0_7] : memref<8x1xf32, #tpu.memory_space<vmem>>, vector<8x1xf32>
    %16 = vector.broadcast %15 : vector<8x1xf32> to vector<8x256xf32>
    %17 = arith.addf %14, %16 : vector<8x256xf32>
    %c0_8 = arith.constant 0 : index
    %c0_9 = arith.constant 0 : index
    %18 = vector.load %arg3[%c0_8, %c0_9] : memref<8x256xf32, #tpu.memory_space<vmem>>, vector<8x256xf32>
    tpu.vector_store %arg3[%c0_8, %c0_9], %17 {strides = array<i32>} : memref<8x256xf32, #tpu.memory_space<vmem>>, vector<8x256xf32>,
    return
  }
}

</mosaic_0001>

<bundles_post_ra>
// kernel: tile.16
= control target key start
LH: loop header
LB: loop body
LE: loop exit
PB: predicated region body
PF: predicated region fallthrough
CT: control target
= control target key end

     0   :  { %s22_s0 = inlined_call_operand.vmem [shape: f32[4], index: 0, kind: input, shape index: {}]   ;;  %s23_s1 = inlined_call_operand.vmem [shape: f32[2,4], index: 1, kind: output, shape index: {}]  }
   0x1   :  { %v4_v0 = vld [vmem:[%s22_s0] ss:$0 sm:$0xff] }
   0x2   :  { %5 = vst [vmem:[%s23_s1] sm:$0x3] %v4_v0 }

// kernel: tile.0
= control target key start
LH: loop header
LB: loop body
LE: loop exit
PB: predicated region body
PF: predicated region fallthrough
CT: control target
= control target key end

     0   :  { %s34_s8 = smov 125   ;;  %vm7_vm0 = vcmask 7168   ;;  %s35_s11 = smov 126   ;;  %s61_s0 = inlined_call_operand.vmem [shape: f32[2,4], index: 0, kind: input, shape index: {}]   ;;  %s62_s1 = inlined_call_operand.vmem [shape: f32[8,1], index: 1, kind: output, shape index: {}]  }
   0x1   :  { %v4_v0 = vld [vmem:[%s61_s0] sm:$0x3]  ;;  %s33_s0 = smov 127  }
   0x2   :  { %5 = vst [vmem:[#allocation0] sm:$0x3] %v4_v0 }
   0x9   :  { %v9_v1 = vld [vmem:[#allocation0] sm:$0x3]  }
   0xa   :  { %v21_v2 = vld [vmem:[#allocation0] sm:$0x3]   ;;  %10 = vrot.lane.b32.xlu0 %v9_v1, %s33_s0 }
   0xb   :  { %22 = vrot.lane.b32.xlu1 %v21_v2, %s34_s8  ;;  %v6_v3 = vld [vmem:[#allocation0] sm:$0x3]  }
   0xc   :  { %v15_v4 = vld [vmem:[#allocation0] sm:$0x3]   ;;  %8 = vst.msk [vmem:[%s62_s1] ss:$4 sm:$0x3] %vm7_vm0, %v6_v3  }
   0xe   :  { %16 = vrot.lane.b32.xlu0 %v15_v4, %s35_s11 }
  0x7c   :  { %v11_v5 = vpop.permute.xlu0 %10  }
  0x7d   :  { %v23_v6 = vpop.permute.xlu1 %22   ;;  %27 = vst.msk [vmem:[%s62_s1 + $0x1] ss:$4 sm:$0x3] %vm7_vm0, %v11_v5  }
  0x7e   :  { %29 = vst.msk [vmem:[%s62_s1 + $0x3] ss:$4 sm:$0x3] %vm7_vm0, %v23_v6  }
  0x80   :  { %v17_v7 = vpop.permute.xlu0 %16  }
  0x81   :  { %28 = vst.msk [vmem:[%s62_s1 + $0x2] ss:$4 sm:$0x3] %vm7_vm0, %v17_v7  }

// kernel: quaternion_batchnorm2d.1
= control target key start
LH: loop header
LB: loop body
LE: loop exit
PB: predicated region body
PF: predicated region fallthrough
CT: control target
= control target key end

     0   :  { %v82_v5 = vmov 0   ;;  %s121_s0 = inlined_call_operand.vmem [shape: f32[8,256], index: 0, kind: input, shape index: {}]   ;;  %s122_s1 = inlined_call_operand.vmem [shape: f32[8,1], index: 1, kind: input, shape index: {}]   ;;  %s123_s2 = inlined_call_operand.vmem [shape: f32[8,1], index: 2, kind: input, shape index: {}]   ;;  %s124_s3 = inlined_call_operand.vmem [shape: f32[8,256], index: 3, kind: output, shape index: {}]  }
   0x1   :  { %v14_v0 = vld [vmem:[%s121_s0] sm:$0xff]  ;;  %v15_v1 = vld [vmem:[%s121_s0 + $0x8] sm:$0xff]  ;;  %76 = vset.pattern.permute.xlu0 %v82_v5  ;;  %77 = vset.pattern.permute.xlu1 %v82_v5 }
   0x2   :  { %v16_v2 = vmul.f32 %v14_v0, %v14_v0  ;;  %v17_v3 = vmul.f32 %v15_v1, %v15_v1  ;;  %v47_v6 = vld [vmem:[%s122_s1] sm:$0xff] }
   0x3   :  { %v55_v7 = vld [vmem:[%s123_s2] sm:$0xff] }
   0x4   :  { %v18_v4 = vadd.f32 %v17_v3, %v16_v2  ;;  %58 = vperm.xlu1 %77, %v55_v7  }
   0x6   :  { %19 = vadd.xlane.f32.xlu0 %v18_v4 }
  0x1c   :  { %50 = vperm.xlu0 %76, %v47_v6  }
  0x83   :  { %v59_v27 = vpop.permute.xlu1 %58 }
  0x93   :  { %v20_v8 = vpop.xlane.xlu0 %19 }
  0x94   :  { %v21_v9 = vrot.slane %v20_v8, 4 }
  0x96   :  { %v22_v10 = vadd.f32 %v21_v9, %v20_v8 }
  0x98   :  { %v23_v11 = vrot.slane %v22_v10, 2 }
  0x9a   :  { %v24_v12 = vadd.f32 %v23_v11, %v22_v10 }
  0x9b   :  { %v51_v24 = vpop.permute.xlu0 %50 }
  0x9c   :  { %v25_v13 = vrot.slane %v24_v12, 1 }
  0x9e   :  { %v26_v14 = vadd.f32 %v25_v13, %v24_v12 }
  0xa0   :  { %69 = vpush %v26_v14 }
  0xd1   :  { %s70_s0 = spop %69 }
  0xd2   :  { %s30_s20 = smul.f32 0.001953125, %s70_s0 }
  0xd4   :  { %s31_s21 = sadd.f32 1e-05, %s30_s20 }
  0xd6   :  { %v32_v15 = vstv %s31_s21 }
  0xd7   :  { %78 = vrsqrt.f32 %v32_v15  ;;  %vm35_vm0 = vcmp.eq.f32.partialorder %v32_v15, inf  ;;  %v38_v18 = vand.u32 2147483648, %v32_v15  ;;  %vm37_vm1 = vcmp.eq.f32.partialorder %v32_v15, 0.0 }
  0xe1   :  { %v79_v16 = vpop.eup %78 }
  0xe2   :  { %v34_v17 = vmul.f32 %v79_v16, %v32_v15 }
  0xe4   :  { %v36_v19 = vsel %vm35_vm0, %v32_v15, %v34_v17 }
  0xe5   :  { %v39_v20 = vsel %vm37_vm1, %v38_v18, %v36_v19 }
  0xe6   :  { %71 = vpush %v39_v20 }
 0x117   :  { %s72_s1 = spop %71 }
 0x118   :  { %v41_v21 = vstv %s72_s1 }
 0x119   :  { %80 = vrcp.f32 %v41_v21 }
 0x123   :  { %v81_v22 = vpop.eup %80 }
 0x124   :  { %73 = vpush %v81_v22 }
 0x155   :  { %s74_s2 = spop %73 }
 0x156   :  { %v44_v23 = vstv %s74_s2 }
 0x157   :  { %v45_v25 = vmul.f32 %v44_v23, %v14_v0  ;;  %v46_v26 = vmul.f32 %v44_v23, %v15_v1 }
 0x159   :  { %v53_v28 = vmul.f32 %v51_v24, %v45_v25  ;;  %v54_v29 = vmul.f32 %v51_v24, %v46_v26 }
 0x15b   :  { %v61_v30 = vadd.f32 %v59_v27, %v53_v28  ;;  %v62_v31 = vadd.f32 %v59_v27, %v54_v29 }
 0x15d   :  { %63 = vst [vmem:[%s124_s3] sm:$0xff] %v61_v30  ;;  %64 = vst [vmem:[%s124_s3 + $0x8] sm:$0xff] %v62_v31 }

</bundles_post_ra>
